<compile_context>
chip_gen: v5e
topology: v5e:2x2
jax: 0.10.0
libtpu: 0.0.40
codegen_flags: <defaults>
</compile_context>

<pallas_src>
import math

import jax
import jax.numpy as jnp
from jax.experimental import pallas as pl
from jax.experimental.pallas import tpu as pltpu


# ------------------------------- kernels ----------------------------------- #

def _ss_lane_dense_kernel(ss_ref, r_ref, b_ref, out_ref):
    """out[r, :] = ss[r, :] @ R + b_tiled   (lane-dense 128-wide output slab).

    ss_ref : (TA, G)        G ss scalars per flat output row (G = 128 // P)
    r_ref  : (G, G*P)       interleave matrix, R[k, k*P + d] = w[d]
    b_ref  : (1, G*P)       bias tiled G times
    out_ref: (TA, G*P)      G*P == 128 -> unmasked full-vreg stores
    """
    out_ref[...] = (
        jnp.dot(ss_ref[...], r_ref[...], preferred_element_type=jnp.float32)
        + b_ref[...]
    ).astype(out_ref.dtype)


def _ss_simple_kernel(ss_ref, w_ref, b_ref, out_ref):
    """Fallback: out[m, d] = ss[m, 0] * w[0, d] + b[0, d]."""
    out_ref[...] = (ss_ref[...] * w_ref[...] + b_ref[...]).astype(out_ref.dtype)


# ------------------------------- wrapper ------------------------------------ #

def secondary_structure_embedder_forward(weight, bias, ss, *, max_row_tile=1024):
    """Pallas equivalent of `nn.Linear(1, pair_dim)(ss)`.

    weight: (pair_dim, 1)  -- PyTorch nn.Linear weight layout
    bias  : (pair_dim,)
    ss    : (..., 1) float
    returns (..., pair_dim) float32
    """
    if ss.shape[-1] != 1:
        raise ValueError("ss must have a trailing dimension of size 1")
    pair_dim = weight.shape[0]
    batch = ss.shape[:-1]
    m = math.prod(batch) if batch else 1

    w_vec = weight.reshape(pair_dim).astype(jnp.float32)
    b_vec = bias.reshape(pair_dim).astype(jnp.float32)
    ss_flat = ss.reshape(m).astype(jnp.float32)

    lane_dense_ok = (
        pair_dim < 128
        and 128 % pair_dim == 0
        and m % (128 // pair_dim) == 0
    )

    if lane_dense_ok:
        g = 128 // pair_dim
        rows = m // g
        width = g * pair_dim  # == 128

        # R[k, k*P + d] = w[d]; zeros elsewhere.  4 KB, built once, VMEM-resident.
        r_mat = (jnp.eye(g, dtype=jnp.float32)[:, :, None]
                 * w_vec[None, None, :]).reshape(g, width)
        b_row = jnp.tile(b_vec, g).reshape(1, width)
        ss2 = ss_flat.reshape(rows, g)

        ta = rows if rows <= max_row_tile else max_row_tile  # max_row_tile % 8 == 0
        grid = (pl.cdiv(rows, ta),)

        out_flat = pl.pallas_call(
            _ss_lane_dense_kernel,
            out_shape=jax.ShapeDtypeStruct((rows, width), jnp.float32),
            grid=grid,
            in_specs=[
                pl.BlockSpec((ta, g), lambda i: (i, 0)),
                pl.BlockSpec((g, width), lambda i: (0, 0)),
                pl.BlockSpec((1, width), lambda i: (0, 0)),
            ],
            out_specs=pl.BlockSpec((ta, width), lambda i: (i, 0)),
            compiler_params=pltpu.CompilerParams(
                dimension_semantics=("parallel",)),
        )(ss2, r_mat, b_row)
        # (rows, G*P) row-major is bit-identical to (M, P) row-major -> free reshape.
        return out_flat.reshape(batch + (pair_dim,))

    # ---- fallback: natural (M, pair_dim) layout, pure VPU fma ---- #
    ss2 = ss_flat.reshape(m, 1)
    w_row = w_vec.reshape(1, pair_dim)
    b_row = b_vec.reshape(1, pair_dim)
    tm = m if m <= max_row_tile else max_row_tile
    grid = (pl.cdiv(m, tm),)

    out = pl.pallas_call(
        _ss_simple_kernel,
        out_shape=jax.ShapeDtypeStruct((m, pair_dim), jnp.float32),
        grid=grid,
        in_specs=[
            pl.BlockSpec((tm, 1), lambda i: (i, 0)),
            pl.BlockSpec((1, pair_dim), lambda i: (0, 0)),
            pl.BlockSpec((1, pair_dim), lambda i: (0, 0)),
        ],
        out_specs=pl.BlockSpec((tm, pair_dim), lambda i: (i, 0)),
        compiler_params=pltpu.CompilerParams(
            dimension_semantics=("parallel",)),
    )(ss2, w_row, b_row)
    return out.reshape(batch + (pair_dim,))


# ------------------------------ reference ----------------------------------- #

def reference_forward(weight, bias, ss):
    # same math as nn.Linear(1, pair_dim): y = ss @ W.T + b
    return ss.astype(jnp.float32) @ weight.T.astype(jnp.float32) + bias.astype(jnp.float32)


# --------------------------------- main -------------------------------------- #

if __name__ == "__main__":
    key = jax.random.PRNGKey(0)
    k_w, k_b, k_ss, k_w2, k_b2, k_ss2 = jax.random.split(key, 6)

    # Config 1: pair_dim=16, ss is an (L, L, 1) secondary-structure pair map.
    # Exercises the lane-dense (flat 128-wide) path.
    pair_dim, L = 16, 16
    weight = 0.1 * jax.random.normal(k_w, (pair_dim, 1), jnp.float32)  # nn.Linear(1, P).weight
    bias = 0.1 * jax.random.normal(k_b, (pair_dim,), jnp.float32)
    ss = jax.random.normal(k_ss, (L, L, 1), jnp.float32)

    out = secondary_structure_embedder_forward(weight, bias, ss)
    jax.block_until_ready(out)
    ref = reference_forward(weight, bias, ss)
    assert out.shape == (L, L, pair_dim)
    assert jnp.allclose(out, ref, atol=1e-5, rtol=1e-5)

    # Config 2: pair_dim that does not divide 128 -> exercises the fallback path.
    pair_dim2, L2 = 20, 8
    weight2 = 0.1 * jax.random.normal(k_w2, (pair_dim2, 1), jnp.float32)
    bias2 = 0.1 * jax.random.normal(k_b2, (pair_dim2,), jnp.float32)
    ss2 = jax.random.normal(k_ss2, (L2, L2, 1), jnp.float32)

    out2 = secondary_structure_embedder_forward(weight2, bias2, ss2)
    jax.block_until_ready(out2)
    ref2 = reference_forward(weight2, bias2, ss2)
    assert out2.shape == (L2, L2, pair_dim2)
    assert jnp.allclose(out2, ref2, atol=1e-5, rtol=1e-5)

    print("KERNEL_OK")
</pallas_src>

<mosaic_0001>
module attributes {stable_mosaic.version = 11 : i64} {
  func.func @_ss_lane_dense_kernel(%arg0: i32, %arg1: memref<32x8xf32, #tpu.memory_space<vmem>>, %arg2: memref<8x128xf32, #tpu.memory_space<vmem>>, %arg3: memref<1x128xf32, #tpu.memory_space<vmem>>, %arg4: memref<32x128xf32, #tpu.memory_space<vmem>>) attributes {dimension_semantics = [#tpu.dimension_semantics<parallel>], iteration_bounds = array<i64: 1>, scalar_prefetch = 0 : i64, scratch_operands = 0 : i64, tpu.core_type = #tpu.core_type<tc>, window_params = [{transform_indices = @transform_0, window_bounds = array<i64: 32, 8>}, {pipeline_mode = #tpu.pipeline_mode<synchronous>, transform_indices = @transform_1, window_bounds = array<i64: 8, 128>}, {pipeline_mode = #tpu.pipeline_mode<synchronous>, transform_indices = @transform_2, window_bounds = array<i64: 1, 128>}, {transform_indices = @transform_3, window_bounds = array<i64: 32, 128>}]} {
    %c0 = arith.constant 0 : index
    %c0_0 = arith.constant 0 : index
    %0 = vector.load %arg1[%c0, %c0_0] : memref<32x8xf32, #tpu.memory_space<vmem>>, vector<32x8xf32>
    %c0_1 = arith.constant 0 : index
    %c0_2 = arith.constant 0 : index
    %1 = vector.load %arg2[%c0_1, %c0_2] : memref<8x128xf32, #tpu.memory_space<vmem>>, vector<8x128xf32>
    %cst = arith.constant dense<0.000000e+00> : vector<32x128xf32>
    %2 = tpu.matmul %0, %1, %cst {dimension_numbers = #tpu.dot_dimension_numbers<[1], [0], [0], [1], [0, 0, 1, 1], [], []>} : vector<32x8xf32>, vector<8x128xf32>, vector<32x128xf32> -> vector<32x128xf32>
    %c0_3 = arith.constant 0 : index
    %c0_4 = arith.constant 0 : index
    %3 = vector.load %arg3[%c0_3, %c0_4] : memref<1x128xf32, #tpu.memory_space<vmem>>, vector<1x128xf32>
    %4 = vector.broadcast %3 : vector<1x128xf32> to vector<32x128xf32>
    %5 = arith.addf %2, %4 : vector<32x128xf32>
    %c0_5 = arith.constant 0 : index
    %c0_6 = arith.constant 0 : index
    %6 = vector.load %arg4[%c0_5, %c0_6] : memref<32x128xf32, #tpu.memory_space<vmem>>, vector<32x128xf32>
    tpu.vector_store %arg4[%c0_5, %c0_6], %5 {strides = array<i32>} : memref<32x128xf32, #tpu.memory_space<vmem>>, vector<32x128xf32>,
    return
  }
  func.func @transform_0(%arg0: i32) -> (i32, i32) {
    %c0_i32 = arith.constant 0 : i32
    %c0_i32_0 = arith.constant 0 : i32
    return %arg0, %c0_i32 : i32, i32
  }
  func.func @transform_1(%arg0: i32) -> (i32, i32) {
    %c0_i32 = arith.constant 0 : i32
    %c0_i32_0 = arith.constant 0 : i32
    %c0_i32_1 = arith.constant 0 : i32
    return %c0_i32, %c0_i32_0 : i32, i32
  }
  func.func @transform_2(%arg0: i32) -> (i32, i32) {
    %c0_i32 = arith.constant 0 : i32
    %c0_i32_0 = arith.constant 0 : i32
    %c0_i32_1 = arith.constant 0 : i32
    return %c0_i32, %c0_i32_0 : i32, i32
  }
  func.func @transform_3(%arg0: i32) -> (i32, i32) {
    %c0_i32 = arith.constant 0 : i32
    %c0_i32_0 = arith.constant 0 : i32
    return %arg0, %c0_i32 : i32, i32
  }
}

</mosaic_0001>

<bundles_post_ra>
// kernel: tpu_custom_call.1
= control target key start
LH: loop header
LB: loop body
LE: loop exit
PB: predicated region body
PF: predicated region fallthrough
CT: control target
= control target key end

     0   :  { %vm24_vm0 = vcmask 64512   ;;  %s169_s0 = inlined_call_operand.vmem [shape: f32[32,8], index: 0, kind: input, shape index: {}]   ;;  %s170_s1 = inlined_call_operand.vmem [shape: f32[8,128], index: 1, kind: input, shape index: {}]   ;;  %s171_s2 = inlined_call_operand.vmem [shape: f32[1,128], index: 2, kind: input, shape index: {}]   ;;  %s172_s3 = inlined_call_operand.hbm [shape: f32[32,128], index: 3, kind: output, shape index: {}]  }
   0x1   :  { %v19_v0 = vld [vmem:[%s170_s1] sm:$0xff]  ;;  %v17_v1 = vld [vmem:[%s169_s0 + $0x10] sm:$0xff]  ;;  %v18_v2 = vld [vmem:[%s169_s0 + $0x18] sm:$0xff] }
   0x2   :  { %93 = vmatpush.msra.mxu2 %v19_v0  ;;  %94 = vmatpush.msra.mxu3 %v19_v0  ;;  %v15_v3 = vld [vmem:[%s169_s0] sm:$0xff]  ;;  %v16_v4 = vld [vmem:[%s169_s0 + $0x8] sm:$0xff] }
   0x3   :  { %90 = vmatmul.msk.f32.vlgmr.msra.gmra.mxu2 %vm24_vm0, %v17_v1  ;;  %91 = vmatmul.msk.f32.vlgmr.msra.gmra.mxu3 %vm24_vm0, %v18_v2 }
   0x4   :  { %8 = vsyncpa [#allocation3], 0  ;;  %52 = vmatpush.msra.mxu0 %v19_v0  ;;  %92 = vmatpush.msra.mxu1 %v19_v0  ;;  %v98_v5 = vld [vmem:[%s171_s2] ss:$0 sm:$0xff]  ;;  %s125_s23 = smov [#allocation2]   ;;  %s76_s0 = sshll.u32 %s172_s3, 4  ;;  %s77_s0 = int_to_ptr.hbm [resolvable:$true] %s76_s0 }
   0x5   :  { %88 = vmatmul.msk.f32.vlgmr.msra.gmra.mxu0 %vm24_vm0, %v15_v3  ;;  %89 = vmatmul.msk.f32.vlgmr.msra.gmra.mxu1 %vm24_vm0, %v16_v4  ;;  %s74_s24 = sshll.u32 %s125_s23, 4  ;;  %s126_s2 = smov 128   ;;  %s75_s24 = int_to_ptr.vmem [resolvable:$true] %s74_s24 }
   0x6   :  { %s127_s27 = smov 8  }
  0x82   :  { %v54_v6 = vpop.f32.mrf.mxu0  ;;  %v57_v7 = vpop.f32.mrf.mxu1 }
  0x83   :  { %v55_v8 = vadd.f32 %v98_v5, %v54_v6  ;;  %v58_v9 = vadd.f32 %v98_v5, %v57_v7 }
  0x85   :  { %66 = vst [vmem:[#allocation2] sm:$0xff] %v55_v8 }
  0x86   :  { %67 = vst [vmem:[#allocation2 + $0x8] sm:$0xff] %v58_v9  ;;  %v60_v10 = vpop.f32.mrf.mxu2  ;;  %v63_v11 = vpop.f32.mrf.mxu3 }
  0x87   :  { %v61_v12 = vadd.f32 %v98_v5, %v60_v10  ;;  %v64_v13 = vadd.f32 %v98_v5, %v63_v11 }
  0x89   :  { %68 = vst [vmem:[#allocation2 + $0x10] sm:$0xff] %v61_v12 }
  0x8a   :  { %69 = vst [vmem:[#allocation2 + $0x18] sm:$0xff] %v64_v13 }
  0x8b   :  { %82 = dma.vmem_to_hbm [thread:$0]  %s75_s24, 512, %s77_s0, [#allocation3], %s126_s2, %s126_s2, %s127_s27  }
  0x8c   :  { %123 = dma.done.wait [#allocation3], 512  }
  0x8d   :  { %124 = vsyncadd [#allocation3], 4294966784 }
  0x8e   :  { %87 = vsyncpa [#allocation3], 1 }

</bundles_post_ra>
